<compile_context>
chip_gen: v5e
topology: v5e:2x2
jax: 0.10.0
libtpu: 0.0.40
codegen_flags: <defaults>
</compile_context>

<pallas_src>
import functools

import jax
import jax.numpy as jnp
from jax import lax
from jax.experimental import pallas as pl
from jax.experimental.pallas import tpu as pltpu


def _lstm_forecast_kernel(x_ref, w_in_ref, b_in_ref, w_ih_ref, w_hh_ref,
                          b_g_ref, w_out_ref, b_out_ref, y_ref,
                          zx_ref, h_all_ref, *, unroll):
    """relu(linearIn(x)) -> single-layer LSTM -> linearOut(last L steps)."""
    T, Bp, Din = x_ref.shape
    H = w_in_ref.shape[1]
    L, _, Dout = y_ref.shape

    # ---- Phase 1: non-recurrent matmuls, hoisted out of the time loop ----
    # linearIn + ReLU for all timesteps at once (M = T*Bp rows on the MXU).
    x_all = x_ref[...].reshape(T * Bp, Din)
    a = jnp.dot(x_all, w_in_ref[...], preferred_element_type=jnp.float32)
    a = jnp.maximum(a + b_in_ref[...], 0.0)                        # (T*Bp, H)
    # Input contribution to the gates (a @ W_ih + b), also for all T at once.
    zx = jnp.dot(a, w_ih_ref[...], preferred_element_type=jnp.float32)
    zx_ref[...] = (zx + b_g_ref[...]).reshape(T, Bp, 4 * H)

    # ---- Phase 2: serial recurrence; only h_prev @ W_hh left per step ----
    w_hh = w_hh_ref[...]

    def step(t, carry):
        h, c = carry
        z = zx_ref[t] + jnp.dot(h, w_hh,
                                preferred_element_type=jnp.float32)  # (Bp, 4H)
        # PyTorch gate order [i, f, g, o]
        i_g = jax.nn.sigmoid(z[:, 0 * H:1 * H])
        f_g = jax.nn.sigmoid(z[:, 1 * H:2 * H])
        g_g = jnp.tanh(z[:, 2 * H:3 * H])
        o_g = jax.nn.sigmoid(z[:, 3 * H:4 * H])
        c_new = f_g * c + i_g * g_g
        h_new = o_g * jnp.tanh(c_new)
        h_all_ref[t] = h_new
        return (h_new, c_new)

    h0 = jnp.zeros((Bp, H), jnp.float32)
    lax.fori_loop(0, T, step, (h0, h0), unroll=unroll)

    # ---- Phase 3: linearOut, only on the last `forecast_length` steps ----
    hs = h_all_ref[pl.ds(T - L, L)].reshape(L * Bp, H)
    y = jnp.dot(hs, w_out_ref[...], preferred_element_type=jnp.float32)
    y_ref[...] = (y + b_out_ref[...]).reshape(L, Bp, Dout)


def simple_lstm_forecast(x, params, forecast_length):
    """Pallas implementation of SimpleLSTMForecast.forward."""
    seq_len, batch, din = x.shape
    w_in_t = params["w_in_t"]          # (Din, H)
    hidden = w_in_t.shape[1]
    dout = params["w_out_t"].shape[1]

    # Pad batch (sublane / MXU-M dimension) to a multiple of 8 for f32.
    b_pad = -(-batch // 8) * 8
    if b_pad != batch:
        x = jnp.pad(x, ((0, 0), (0, b_pad - batch), (0, 0)))

    kernel = functools.partial(_lstm_forecast_kernel,
                               unroll=bool(seq_len <= 16))

    out = pl.pallas_call(
        kernel,
        out_shape=jax.ShapeDtypeStruct((forecast_length, b_pad, dout),
                                       jnp.float32),
        grid_spec=pltpu.PrefetchScalarGridSpec(
            num_scalar_prefetch=0,
            grid=(1,),                                  # single invocation
            in_specs=[
                pl.BlockSpec((seq_len, b_pad, din), lambda i: (0, 0, 0)),
                pl.BlockSpec((din, hidden), lambda i: (0, 0)),
                pl.BlockSpec((1, hidden), lambda i: (0, 0)),
                pl.BlockSpec((hidden, 4 * hidden), lambda i: (0, 0)),
                pl.BlockSpec((hidden, 4 * hidden), lambda i: (0, 0)),
                pl.BlockSpec((1, 4 * hidden), lambda i: (0, 0)),
                pl.BlockSpec((hidden, dout), lambda i: (0, 0)),
                pl.BlockSpec((1, dout), lambda i: (0, 0)),
            ],
            out_specs=pl.BlockSpec((forecast_length, b_pad, dout),
                                   lambda i: (0, 0, 0)),
            scratch_shapes=[
                pltpu.VMEM((seq_len, b_pad, 4 * hidden), jnp.float32),  # zx
                pltpu.VMEM((seq_len, b_pad, hidden), jnp.float32),      # h_t's
            ],
        ),
        compiler_params=pltpu.CompilerParams(
            dimension_semantics=("arbitrary",)),
    )(x, params["w_in_t"], params["b_in"], params["w_ih_t"],
      params["w_hh_t"], params["b_g"], params["w_out_t"], params["b_out"])

    # Glue: drop the batch padding (rows are independent through the LSTM).
    return out[:, :batch, :]


def _reference_forward(x, params, forecast_length):
    """Pure-JAX reference reproducing the PyTorch forward semantics."""
    a = jnp.maximum(x @ params["w_in_t"] + params["b_in"], 0.0)   # (T,B,H)
    hdim = params["w_in_t"].shape[1]
    batch = x.shape[1]

    def step(carry, a_t):
        h, c = carry
        z = a_t @ params["w_ih_t"] + h @ params["w_hh_t"] + params["b_g"]
        i = jax.nn.sigmoid(z[:, 0 * hdim:1 * hdim])
        f = jax.nn.sigmoid(z[:, 1 * hdim:2 * hdim])
        g = jnp.tanh(z[:, 2 * hdim:3 * hdim])
        o = jax.nn.sigmoid(z[:, 3 * hdim:4 * hdim])
        c = f * c + i * g
        h = o * jnp.tanh(c)
        return (h, c), h

    h0 = jnp.zeros((batch, hdim), jnp.float32)
    (_, _), hs = jax.lax.scan(step, (h0, h0), a)
    y = hs @ params["w_out_t"] + params["b_out"]
    return y[-forecast_length:, :, :]


def init_params(key, input_size, output_size, hidden_size):
    """Deterministic synthetic parameters (shapes match the PyTorch module)."""
    ks = jax.random.split(key, 8)
    bound = 1.0 / jnp.sqrt(hidden_size)
    u = lambda k, shape: jax.random.uniform(k, shape, jnp.float32, -bound, bound)
    # Stored pre-transposed so the kernel does row-major (act @ W) matmuls.
    return {
        "w_in_t":  u(ks[0], (input_size, hidden_size)),
        "b_in":    u(ks[1], (1, hidden_size)),
        "w_ih_t":  u(ks[2], (hidden_size, 4 * hidden_size)),
        "w_hh_t":  u(ks[3], (hidden_size, 4 * hidden_size)),
        "b_g":     u(ks[4], (1, 4 * hidden_size)) + u(ks[5], (1, 4 * hidden_size)),
        "w_out_t": u(ks[6], (hidden_size, output_size)),
        "b_out":   u(ks[7], (1, output_size)),
    }
    # NOTE: dropout dr=0.0 and num_layers=1 => nn.LSTM applies no dropout.


if __name__ == "__main__":
    seq_len, batch, input_size = 8, 2, 4
    hidden_size, output_size, forecast_length = 32, 2, 3

    key = jax.random.PRNGKey(0)
    k_x, k_p = jax.random.split(key)
    x = jax.random.normal(k_x, (seq_len, batch, input_size), jnp.float32)
    params = init_params(k_p, input_size, output_size, hidden_size)

    fwd = jax.jit(functools.partial(simple_lstm_forecast,
                                    forecast_length=forecast_length))
    out = jax.block_until_ready(fwd(x, params))
    assert out.shape == (forecast_length, batch, output_size), out.shape

    ref = _reference_forward(x, params, forecast_length)
    assert jnp.allclose(out, ref, atol=1e-4, rtol=1e-4), \
        float(jnp.max(jnp.abs(out - ref)))

    print("KERNEL_OK")
</pallas_src>

<mosaic_0001>
module attributes {stable_mosaic.version = 11 : i64} {
  func.func @_lstm_forecast_kernel(%arg0: i32, %arg1: memref<8x8x4xf32, #tpu.memory_space<vmem>>, %arg2: memref<4x32xf32, #tpu.memory_space<vmem>>, %arg3: memref<1x32xf32, #tpu.memory_space<vmem>>, %arg4: memref<32x128xf32, #tpu.memory_space<vmem>>, %arg5: memref<32x128xf32, #tpu.memory_space<vmem>>, %arg6: memref<1x128xf32, #tpu.memory_space<vmem>>, %arg7: memref<32x2xf32, #tpu.memory_space<vmem>>, %arg8: memref<1x2xf32, #tpu.memory_space<vmem>>, %arg9: memref<3x8x2xf32, #tpu.memory_space<vmem>>, %arg10: memref<8x8x128xf32, #tpu.memory_space<vmem>>, %arg11: memref<8x8x32xf32, #tpu.memory_space<vmem>>) attributes {dimension_semantics = [#tpu.dimension_semantics<arbitrary>], iteration_bounds = array<i64: 1>, scalar_prefetch = 0 : i64, scratch_operands = 2 : i64, tpu.core_type = #tpu.core_type<tc>, window_params = [{pipeline_mode = #tpu.pipeline_mode<synchronous>, transform_indices = @transform_0, window_bounds = array<i64: 8, 8, 4>}, {pipeline_mode = #tpu.pipeline_mode<synchronous>, transform_indices = @transform_1, window_bounds = array<i64: 4, 32>}, {pipeline_mode = #tpu.pipeline_mode<synchronous>, transform_indices = @transform_2, window_bounds = array<i64: 1, 32>}, {pipeline_mode = #tpu.pipeline_mode<synchronous>, transform_indices = @transform_3, window_bounds = array<i64: 32, 128>}, {pipeline_mode = #tpu.pipeline_mode<synchronous>, transform_indices = @transform_4, window_bounds = array<i64: 32, 128>}, {pipeline_mode = #tpu.pipeline_mode<synchronous>, transform_indices = @transform_5, window_bounds = array<i64: 1, 128>}, {pipeline_mode = #tpu.pipeline_mode<synchronous>, transform_indices = @transform_6, window_bounds = array<i64: 32, 2>}, {pipeline_mode = #tpu.pipeline_mode<synchronous>, transform_indices = @transform_7, window_bounds = array<i64: 1, 2>}, {pipeline_mode = #tpu.pipeline_mode<synchronous>, transform_indices = @transform_8, window_bounds = array<i64: 3, 8, 2>}]} {
    %c0 = arith.constant 0 : index
    %c0_0 = arith.constant 0 : index
    %c0_1 = arith.constant 0 : index
    %0 = vector.load %arg1[%c0, %c0_0, %c0_1] : memref<8x8x4xf32, #tpu.memory_space<vmem>>, vector<8x8x4xf32>
    %1 = vector.shape_cast %0 : vector<8x8x4xf32> to vector<64x4xf32>
    %c0_2 = arith.constant 0 : index
    %c0_3 = arith.constant 0 : index
    %2 = vector.load %arg2[%c0_2, %c0_3] : memref<4x32xf32, #tpu.memory_space<vmem>>, vector<4x32xf32>
    %cst = arith.constant dense<0.000000e+00> : vector<64x32xf32>
    %3 = tpu.matmul %1, %2, %cst {dimension_numbers = #tpu.dot_dimension_numbers<[1], [0], [0], [1], [0, 0, 1, 1], [], []>} : vector<64x4xf32>, vector<4x32xf32>, vector<64x32xf32> -> vector<64x32xf32>
    %c0_4 = arith.constant 0 : index
    %c0_5 = arith.constant 0 : index
    %4 = vector.load %arg3[%c0_4, %c0_5] : memref<1x32xf32, #tpu.memory_space<vmem>>, vector<1x32xf32>
    %5 = vector.broadcast %4 : vector<1x32xf32> to vector<64x32xf32>
    %6 = arith.addf %3, %5 : vector<64x32xf32>
    %cst_6 = arith.constant 0.000000e+00 : f32
    %7 = vector.broadcast %cst_6 : f32 to vector<64x32xf32>
    %8 = arith.maximumf %6, %7 : vector<64x32xf32>
    %c0_7 = arith.constant 0 : index
    %c0_8 = arith.constant 0 : index
    %9 = vector.load %arg4[%c0_7, %c0_8] : memref<32x128xf32, #tpu.memory_space<vmem>>, vector<32x128xf32>
    %cst_9 = arith.constant dense<0.000000e+00> : vector<64x128xf32>
    %10 = tpu.matmul %8, %9, %cst_9 {dimension_numbers = #tpu.dot_dimension_numbers<[1], [0], [0], [1], [0, 0, 1, 1], [], []>} : vector<64x32xf32>, vector<32x128xf32>, vector<64x128xf32> -> vector<64x128xf32>
    %c0_10 = arith.constant 0 : index
    %c0_11 = arith.constant 0 : index
    %11 = vector.load %arg6[%c0_10, %c0_11] : memref<1x128xf32, #tpu.memory_space<vmem>>, vector<1x128xf32>
    %12 = vector.broadcast %11 : vector<1x128xf32> to vector<64x128xf32>
    %13 = arith.addf %10, %12 : vector<64x128xf32>
    %14 = vector.shape_cast %13 : vector<64x128xf32> to vector<8x8x128xf32>
    %c0_12 = arith.constant 0 : index
    %c0_13 = arith.constant 0 : index
    %c0_14 = arith.constant 0 : index
    %15 = vector.load %arg10[%c0_12, %c0_13, %c0_14] : memref<8x8x128xf32, #tpu.memory_space<vmem>>, vector<8x8x128xf32>
    tpu.vector_store %arg10[%c0_12, %c0_13, %c0_14], %14 {strides = array<i32>} : memref<8x8x128xf32, #tpu.memory_space<vmem>>, vector<8x8x128xf32>,
    %c0_15 = arith.constant 0 : index
    %c0_16 = arith.constant 0 : index
    %16 = vector.load %arg5[%c0_15, %c0_16] : memref<32x128xf32, #tpu.memory_space<vmem>>, vector<32x128xf32>
    %cst_17 = arith.constant 0.000000e+00 : f32
    %17 = vector.broadcast %cst_17 : f32 to vector<8x32xf32>
    %c0_i32 = arith.constant 0 : i32
    %18 = arith.index_cast %c0_i32 : i32 to index
    %c0_18 = arith.constant 0 : index
    %c0_19 = arith.constant 0 : index
    %19 = vector.load %arg10[%18, %c0_18, %c0_19] : memref<8x8x128xf32, #tpu.memory_space<vmem>>, vector<1x8x128xf32>
    %20 = vector.shape_cast %19 : vector<1x8x128xf32> to vector<8x128xf32>
    %cst_20 = arith.constant dense<0.000000e+00> : vector<8x128xf32>
    %21 = tpu.matmul %17, %16, %cst_20 {dimension_numbers = #tpu.dot_dimension_numbers<[1], [0], [0], [1], [0, 0, 1, 1], [], []>} : vector<8x32xf32>, vector<32x128xf32>, vector<8x128xf32> -> vector<8x128xf32>
    %22 = arith.addf %20, %21 : vector<8x128xf32>
    %23 = vector.extract_strided_slice %22 {offsets = [0, 0], sizes = [8, 32], strides = [1, 1]} : vector<8x128xf32> to vector<8x32xf32>
    %24 = arith.negf %23 : vector<8x32xf32>
    %25 = math.exp %24 : vector<8x32xf32>
    %cst_21 = arith.constant 1.000000e+00 : f32
    %26 = vector.broadcast %cst_21 : f32 to vector<8x32xf32>
    %27 = arith.addf %26, %25 : vector<8x32xf32>
    %28 = arith.divf %26, %27 : vector<8x32xf32>
    %29 = vector.extract_strided_slice %22 {offsets = [0, 32], sizes = [8, 32], strides = [1, 1]} : vector<8x128xf32> to vector<8x32xf32>
    %30 = arith.negf %29 : vector<8x32xf32>
    %31 = math.exp %30 : vector<8x32xf32>
    %cst_22 = arith.constant 1.000000e+00 : f32
    %32 = vector.broadcast %cst_22 : f32 to vector<8x32xf32>
    %33 = arith.addf %32, %31 : vector<8x32xf32>
    %34 = arith.divf %32, %33 : vector<8x32xf32>
    %35 = vector.extract_strided_slice %22 {offsets = [0, 64], sizes = [8, 32], strides = [1, 1]} : vector<8x128xf32> to vector<8x32xf32>
    %36 = math.tanh %35 : vector<8x32xf32>
    %37 = vector.extract_strided_slice %22 {offsets = [0, 96], sizes = [8, 32], strides = [1, 1]} : vector<8x128xf32> to vector<8x32xf32>
    %38 = arith.negf %37 : vector<8x32xf32>
    %39 = math.exp %38 : vector<8x32xf32>
    %cst_23 = arith.constant 1.000000e+00 : f32
    %40 = vector.broadcast %cst_23 : f32 to vector<8x32xf32>
    %41 = arith.addf %40, %39 : vector<8x32xf32>
    %42 = arith.divf %40, %41 : vector<8x32xf32>
    %43 = arith.mulf %34, %17 : vector<8x32xf32>
    %44 = arith.mulf %28, %36 : vector<8x32xf32>
    %45 = arith.addf %43, %44 : vector<8x32xf32>
    %46 = math.tanh %45 : vector<8x32xf32>
    %47 = arith.mulf %42, %46 : vector<8x32xf32>
    %48 = arith.index_cast %c0_i32 : i32 to index
    %c0_24 = arith.constant 0 : index
    %c0_25 = arith.constant 0 : index
    %49 = vector.load %arg11[%48, %c0_24, %c0_25] : memref<8x8x32xf32, #tpu.memory_space<vmem>>, vector<1x8x32xf32>
    %50 = vector.shape_cast %49 : vector<1x8x32xf32> to vector<8x32xf32>
    %51 = vector.shape_cast %47 : vector<8x32xf32> to vector<1x8x32xf32>
    tpu.vector_store %arg11[%48, %c0_24, %c0_25], %51 {strides = array<i32>} : memref<8x8x32xf32, #tpu.memory_space<vmem>>, vector<1x8x32xf32>,
    %c1_i32 = arith.constant 1 : i32
    %52 = arith.index_cast %c1_i32 : i32 to index
    %c0_26 = arith.constant 0 : index
    %c0_27 = arith.constant 0 : index
    %53 = vector.load %arg10[%52, %c0_26, %c0_27] : memref<8x8x128xf32, #tpu.memory_space<vmem>>, vector<1x8x128xf32>
    %54 = vector.shape_cast %53 : vector<1x8x128xf32> to vector<8x128xf32>
    %cst_28 = arith.constant dense<0.000000e+00> : vector<8x128xf32>
    %55 = tpu.matmul %47, %16, %cst_28 {dimension_numbers = #tpu.dot_dimension_numbers<[1], [0], [0], [1], [0, 0, 1, 1], [], []>} : vector<8x32xf32>, vector<32x128xf32>, vector<8x128xf32> -> vector<8x128xf32>
    %56 = arith.addf %54, %55 : vector<8x128xf32>
    %57 = vector.extract_strided_slice %56 {offsets = [0, 0], sizes = [8, 32], strides = [1, 1]} : vector<8x128xf32> to vector<8x32xf32>
    %58 = arith.negf %57 : vector<8x32xf32>
    %59 = math.exp %58 : vector<8x32xf32>
    %cst_29 = arith.constant 1.000000e+00 : f32
    %60 = vector.broadcast %cst_29 : f32 to vector<8x32xf32>
    %61 = arith.addf %60, %59 : vector<8x32xf32>
    %62 = arith.divf %60, %61 : vector<8x32xf32>
    %63 = vector.extract_strided_slice %56 {offsets = [0, 32], sizes = [8, 32], strides = [1, 1]} : vector<8x128xf32> to vector<8x32xf32>
    %64 = arith.negf %63 : vector<8x32xf32>
    %65 = math.exp %64 : vector<8x32xf32>
    %cst_30 = arith.constant 1.000000e+00 : f32
    %66 = vector.broadcast %cst_30 : f32 to vector<8x32xf32>
    %67 = arith.addf %66, %65 : vector<8x32xf32>
    %68 = arith.divf %66, %67 : vector<8x32xf32>
    %69 = vector.extract_strided_slice %56 {offsets = [0, 64], sizes = [8, 32], strides = [1, 1]} : vector<8x128xf32> to vector<8x32xf32>
    %70 = math.tanh %69 : vector<8x32xf32>
    %71 = vector.extract_strided_slice %56 {offsets = [0, 96], sizes = [8, 32], strides = [1, 1]} : vector<8x128xf32> to vector<8x32xf32>
    %72 = arith.negf %71 : vector<8x32xf32>
    %73 = math.exp %72 : vector<8x32xf32>
    %cst_31 = arith.constant 1.000000e+00 : f32
    %74 = vector.broadcast %cst_31 : f32 to vector<8x32xf32>
    %75 = arith.addf %74, %73 : vector<8x32xf32>
    %76 = arith.divf %74, %75 : vector<8x32xf32>
    %77 = arith.mulf %68, %45 : vector<8x32xf32>
    %78 = arith.mulf %62, %70 : vector<8x32xf32>
    %79 = arith.addf %77, %78 : vector<8x32xf32>
    %80 = math.tanh %79 : vector<8x32xf32>
    %81 = arith.mulf %76, %80 : vector<8x32xf32>
    %82 = arith.index_cast %c1_i32 : i32 to index
    %c0_32 = arith.constant 0 : index
    %c0_33 = arith.constant 0 : index
    %83 = vector.load %arg11[%82, %c0_32, %c0_33] : memref<8x8x32xf32, #tpu.memory_space<vmem>>, vector<1x8x32xf32>
    %84 = vector.shape_cast %83 : vector<1x8x32xf32> to vector<8x32xf32>
    %85 = vector.shape_cast %81 : vector<8x32xf32> to vector<1x8x32xf32>
    tpu.vector_store %arg11[%82, %c0_32, %c0_33], %85 {strides = array<i32>} : memref<8x8x32xf32, #tpu.memory_space<vmem>>, vector<1x8x32xf32>,
    %c2_i32 = arith.constant 2 : i32
    %86 = arith.index_cast %c2_i32 : i32 to index
    %c0_34 = arith.constant 0 : index
    %c0_35 = arith.constant 0 : index
    %87 = vector.load %arg10[%86, %c0_34, %c0_35] : memref<8x8x128xf32, #tpu.memory_space<vmem>>, vector<1x8x128xf32>
    %88 = vector.shape_cast %87 : vector<1x8x128xf32> to vector<8x128xf32>
    %cst_36 = arith.constant dense<0.000000e+00> : vector<8x128xf32>
    %89 = tpu.matmul %81, %16, %cst_36 {dimension_numbers = #tpu.dot_dimension_numbers<[1], [0], [0], [1], [0, 0, 1, 1], [], []>} : vector<8x32xf32>, vector<32x128xf32>, vector<8x128xf32> -> vector<8x128xf32>
    %90 = arith.addf %88, %89 : vector<8x128xf32>
    %91 = vector.extract_strided_slice %90 {offsets = [0, 0], sizes = [8, 32], strides = [1, 1]} : vector<8x128xf32> to vector<8x32xf32>
    %92 = arith.negf %91 : vector<8x32xf32>
    %93 = math.exp %92 : vector<8x32xf32>
    %cst_37 = arith.constant 1.000000e+00 : f32
    %94 = vector.broadcast %cst_37 : f32 to vector<8x32xf32>
    %95 = arith.addf %94, %93 : vector<8x32xf32>
    %96 = arith.divf %94, %95 : vector<8x32xf32>
    %97 = vector.extract_strided_slice %90 {offsets = [0, 32], sizes = [8, 32], strides = [1, 1]} : vector<8x128xf32> to vector<8x32xf32>
    %98 = arith.negf %97 : vector<8x32xf32>
    %99 = math.exp %98 : vector<8x32xf32>
    %cst_38 = arith.constant 1.000000e+00 : f32
    %100 = vector.broadcast %cst_38 : f32 to vector<8x32xf32>
    %101 = arith.addf %100, %99 : vector<8x32xf32>
    %102 = arith.divf %100, %101 : vector<8x32xf32>
    %103 = vector.extract_strided_slice %90 {offsets = [0, 64], sizes = [8, 32], strides = [1, 1]} : vector<8x128xf32> to vector<8x32xf32>
    %104 = math.tanh %103 : vector<8x32xf32>
    %105 = vector.extract_strided_slice %90 {offsets = [0, 96], sizes = [8, 32], strides = [1, 1]} : vector<8x128xf32> to vector<8x32xf32>
    %106 = arith.negf %105 : vector<8x32xf32>
    %107 = math.exp %106 : vector<8x32xf32>
    %cst_39 = arith.constant 1.000000e+00 : f32
    %108 = vector.broadcast %cst_39 : f32 to vector<8x32xf32>
    %109 = arith.addf %108, %107 : vector<8x32xf32>
    %110 = arith.divf %108, %109 : vector<8x32xf32>
    %111 = arith.mulf %102, %79 : vector<8x32xf32>
    %112 = arith.mulf %96, %104 : vector<8x32xf32>
    %113 = arith.addf %111, %112 : vector<8x32xf32>
    %114 = math.tanh %113 : vector<8x32xf32>
    %115 = arith.mulf %110, %114 : vector<8x32xf32>
    %116 = arith.index_cast %c2_i32 : i32 to index
    %c0_40 = arith.constant 0 : index
    %c0_41 = arith.constant 0 : index
    %117 = vector.load %arg11[%116, %c0_40, %c0_41] : memref<8x8x32xf32, #tpu.memory_space<vmem>>, vector<1x8x32xf32>
    %118 = vector.shape_cast %117 : vector<1x8x32xf32> to vector<8x32xf32>
    %119 = vector.shape_cast %115 : vector<8x32xf32> to vector<1x8x32xf32>
    tpu.vector_store %arg11[%116, %c0_40, %c0_41], %119 {strides = array<i32>} : memref<8x8x32xf32, #tpu.memory_space<vmem>>, vector<1x8x32xf32>,
    %c3_i32 = arith.constant 3 : i32
    %120 = arith.index_cast %c3_i32 : i32 to index
    %c0_42 = arith.constant 0 : index
    %c0_43 = arith.constant 0 : index
    %121 = vector.load %arg10[%120, %c0_42, %c0_43] : memref<8x8x128xf32, #tpu.memory_space<vmem>>, vector<1x8x128xf32>
    %122 = vector.shape_cast %121 : vector<1x8x128xf32> to vector<8x128xf32>
    %cst_44 = arith.constant dense<0.000000e+00> : vector<8x128xf32>
    %123 = tpu.matmul %115, %16, %cst_44 {dimension_numbers = #tpu.dot_dimension_numbers<[1], [0], [0], [1], [0, 0, 1, 1], [], []>} : vector<8x32xf32>, vector<32x128xf32>, vector<8x128xf32> -> vector<8x128xf32>
    %124 = arith.addf %122, %123 : vector<8x128xf32>
    %125 = vector.extract_strided_slice %124 {offsets = [0, 0], sizes = [8, 32], strides = [1, 1]} : vector<8x128xf32> to vector<8x32xf32>
    %126 = arith.negf %125 : vector<8x32xf32>
    %127 = math.exp %126 : vector<8x32xf32>
    %cst_45 = arith.constant 1.000000e+00 : f32
    %128 = vector.broadcast %cst_45 : f32 to vector<8x32xf32>
    %129 = arith.addf %128, %127 : vector<8x32xf32>
    %130 = arith.divf %128, %129 : vector<8x32xf32>
    %131 = vector.extract_strided_slice %124 {offsets = [0, 32], sizes = [8, 32], strides = [1, 1]} : vector<8x128xf32> to vector<8x32xf32>
    %132 = arith.negf %131 : vector<8x32xf32>
    %133 = math.exp %132 : vector<8x32xf32>
    %cst_46 = arith.constant 1.000000e+00 : f32
    %134 = vector.broadcast %cst_46 : f32 to vector<8x32xf32>
    %135 = arith.addf %134, %133 : vector<8x32xf32>
    %136 = arith.divf %134, %135 : vector<8x32xf32>
    %137 = vector.extract_strided_slice %124 {offsets = [0, 64], sizes = [8, 32], strides = [1, 1]} : vector<8x128xf32> to vector<8x32xf32>
    %138 = math.tanh %137 : vector<8x32xf32>
    %139 = vector.extract_strided_slice %124 {offsets = [0, 96], sizes = [8, 32], strides = [1, 1]} : vector<8x128xf32> to vector<8x32xf32>
    %140 = arith.negf %139 : vector<8x32xf32>
    %141 = math.exp %140 : vector<8x32xf32>
    %cst_47 = arith.constant 1.000000e+00 : f32
    %142 = vector.broadcast %cst_47 : f32 to vector<8x32xf32>
    %143 = arith.addf %142, %141 : vector<8x32xf32>
    %144 = arith.divf %142, %143 : vector<8x32xf32>
    %145 = arith.mulf %136, %113 : vector<8x32xf32>
    %146 = arith.mulf %130, %138 : vector<8x32xf32>
    %147 = arith.addf %145, %146 : vector<8x32xf32>
    %148 = math.tanh %147 : vector<8x32xf32>
    %149 = arith.mulf %144, %148 : vector<8x32xf32>
    %150 = arith.index_cast %c3_i32 : i32 to index
    %c0_48 = arith.constant 0 : index
    %c0_49 = arith.constant 0 : index
    %151 = vector.load %arg11[%150, %c0_48, %c0_49] : memref<8x8x32xf32, #tpu.memory_space<vmem>>, vector<1x8x32xf32>
    %152 = vector.shape_cast %151 : vector<1x8x32xf32> to vector<8x32xf32>
    %153 = vector.shape_cast %149 : vector<8x32xf32> to vector<1x8x32xf32>
    tpu.vector_store %arg11[%150, %c0_48, %c0_49], %153 {strides = array<i32>} : memref<8x8x32xf32, #tpu.memory_space<vmem>>, vector<1x8x32xf32>,
    %c4_i32 = arith.constant 4 : i32
    %154 = arith.index_cast %c4_i32 : i32 to index
    %c0_50 = arith.constant 0 : index
    %c0_51 = arith.constant 0 : index
    %155 = vector.load %arg10[%154, %c0_50, %c0_51] : memref<8x8x128xf32, #tpu.memory_space<vmem>>, vector<1x8x128xf32>
    %156 = vector.shape_cast %155 : vector<1x8x128xf32> to vector<8x128xf32>
    %cst_52 = arith.constant dense<0.000000e+00> : vector<8x128xf32>
    %157 = tpu.matmul %149, %16, %cst_52 {dimension_numbers = #tpu.dot_dimension_numbers<[1], [0], [0], [1], [0, 0, 1, 1], [], []>} : vector<8x32xf32>, vector<32x128xf32>, vector<8x128xf32> -> vector<8x128xf32>
    %158 = arith.addf %156, %157 : vector<8x128xf32>
    %159 = vector.extract_strided_slice %158 {offsets = [0, 0], sizes = [8, 32], strides = [1, 1]} : vector<8x128xf32> to vector<8x32xf32>
    %160 = arith.negf %159 : vector<8x32xf32>
    %161 = math.exp %160 : vector<8x32xf32>
    %cst_53 = arith.constant 1.000000e+00 : f32
    %162 = vector.broadcast %cst_53 : f32 to vector<8x32xf32>
    %163 = arith.addf %162, %161 : vector<8x32xf32>
    %164 = arith.divf %162, %163 : vector<8x32xf32>
    %165 = vector.extract_strided_slice %158 {offsets = [0, 32], sizes = [8, 32], strides = [1, 1]} : vector<8x128xf32> to vector<8x32xf32>
    %166 = arith.negf %165 : vector<8x32xf32>
    %167 = math.exp %166 : vector<8x32xf32>
    %cst_54 = arith.constant 1.000000e+00 : f32
    %168 = vector.broadcast %cst_54 : f32 to vector<8x32xf32>
    %169 = arith.addf %168, %167 : vector<8x32xf32>
    %170 = arith.divf %168, %169 : vector<8x32xf32>
    %171 = vector.extract_strided_slice %158 {offsets = [0, 64], sizes = [8, 32], strides = [1, 1]} : vector<8x128xf32> to vector<8x32xf32>
    %172 = math.tanh %171 : vector<8x32xf32>
    %173 = vector.extract_strided_slice %158 {offsets = [0, 96], sizes = [8, 32], strides = [1, 1]} : vector<8x128xf32> to vector<8x32xf32>
    %174 = arith.negf %173 : vector<8x32xf32>
    %175 = math.exp %174 : vector<8x32xf32>
    %cst_55 = arith.constant 1.000000e+00 : f32
    %176 = vector.broadcast %cst_55 : f32 to vector<8x32xf32>
    %177 = arith.addf %176, %175 : vector<8x32xf32>
    %178 = arith.divf %176, %177 : vector<8x32xf32>
    %179 = arith.mulf %170, %147 : vector<8x32xf32>
    %180 = arith.mulf %164, %172 : vector<8x32xf32>
    %181 = arith.addf %179, %180 : vector<8x32xf32>
    %182 = math.tanh %181 : vector<8x32xf32>
    %183 = arith.mulf %178, %182 : vector<8x32xf32>
    %184 = arith.index_cast %c4_i32 : i32 to index
    %c0_56 = arith.constant 0 : index
    %c0_57 = arith.constant 0 : index
    %185 = vector.load %arg11[%184, %c0_56, %c0_57] : memref<8x8x32xf32, #tpu.memory_space<vmem>>, vector<1x8x32xf32>
    %186 = vector.shape_cast %185 : vector<1x8x32xf32> to vector<8x32xf32>
    %187 = vector.shape_cast %183 : vector<8x32xf32> to vector<1x8x32xf32>
    tpu.vector_store %arg11[%184, %c0_56, %c0_57], %187 {strides = array<i32>} : memref<8x8x32xf32, #tpu.memory_space<vmem>>, vector<1x8x32xf32>,
    %c5_i32 = arith.constant 5 : i32
    %188 = arith.index_cast %c5_i32 : i32 to index
    %c0_58 = arith.constant 0 : index
    %c0_59 = arith.constant 0 : index
    %189 = vector.load %arg10[%188, %c0_58, %c0_59] : memref<8x8x128xf32, #tpu.memory_space<vmem>>, vector<1x8x128xf32>
    %190 = vector.shape_cast %189 : vector<1x8x128xf32> to vector<8x128xf32>
    %cst_60 = arith.constant dense<0.000000e+00> : vector<8x128xf32>
    %191 = tpu.matmul %183, %16, %cst_60 {dimension_numbers = #tpu.dot_dimension_numbers<[1], [0], [0], [1], [0, 0, 1, 1], [], []>} : vector<8x32xf32>, vector<32x128xf32>, vector<8x128xf32> -> vector<8x128xf32>
    %192 = arith.addf %190, %191 : vector<8x128xf32>
    %193 = vector.extract_strided_slice %192 {offsets = [0, 0], sizes = [8, 32], strides = [1, 1]} : vector<8x128xf32> to vector<8x32xf32>
    %194 = arith.negf %193 : vector<8x32xf32>
    %195 = math.exp %194 : vector<8x32xf32>
    %cst_61 = arith.constant 1.000000e+00 : f32
    %196 = vector.broadcast %cst_61 : f32 to vector<8x32xf32>
    %197 = arith.addf %196, %195 : vector<8x32xf32>
    %198 = arith.divf %196, %197 : vector<8x32xf32>
    %199 = vector.extract_strided_slice %192 {offsets = [0, 32], sizes = [8, 32], strides = [1, 1]} : vector<8x128xf32> to vector<8x32xf32>
    %200 = arith.negf %199 : vector<8x32xf32>
    %201 = math.exp %200 : vector<8x32xf32>
    %cst_62 = arith.constant 1.000000e+00 : f32
    %202 = vector.broadcast %cst_62 : f32 to vector<8x32xf32>
    %203 = arith.addf %202, %201 : vector<8x32xf32>
    %204 = arith.divf %202, %203 : vector<8x32xf32>
    %205 = vector.extract_strided_slice %192 {offsets = [0, 64], sizes = [8, 32], strides = [1, 1]} : vector<8x128xf32> to vector<8x32xf32>
    %206 = math.tanh %205 : vector<8x32xf32>
    %207 = vector.extract_strided_slice %192 {offsets = [0, 96], sizes = [8, 32], strides = [1, 1]} : vector<8x128xf32> to vector<8x32xf32>
    %208 = arith.negf %207 : vector<8x32xf32>
    %209 = math.exp %208 : vector<8x32xf32>
    %cst_63 = arith.constant 1.000000e+00 : f32
    %210 = vector.broadcast %cst_63 : f32 to vector<8x32xf32>
    %211 = arith.addf %210, %209 : vector<8x32xf32>
    %212 = arith.divf %210, %211 : vector<8x32xf32>
    %213 = arith.mulf %204, %181 : vector<8x32xf32>
    %214 = arith.mulf %198, %206 : vector<8x32xf32>
    %215 = arith.addf %213, %214 : vector<8x32xf32>
    %216 = math.tanh %215 : vector<8x32xf32>
    %217 = arith.mulf %212, %216 : vector<8x32xf32>
    %218 = arith.index_cast %c5_i32 : i32 to index
    %c0_64 = arith.constant 0 : index
    %c0_65 = arith.constant 0 : index
    %219 = vector.load %arg11[%218, %c0_64, %c0_65] : memref<8x8x32xf32, #tpu.memory_space<vmem>>, vector<1x8x32xf32>
    %220 = vector.shape_cast %219 : vector<1x8x32xf32> to vector<8x32xf32>
    %221 = vector.shape_cast %217 : vector<8x32xf32> to vector<1x8x32xf32>
    tpu.vector_store %arg11[%218, %c0_64, %c0_65], %221 {strides = array<i32>} : memref<8x8x32xf32, #tpu.memory_space<vmem>>, vector<1x8x32xf32>,
    %c6_i32 = arith.constant 6 : i32
    %222 = arith.index_cast %c6_i32 : i32 to index
    %c0_66 = arith.constant 0 : index
    %c0_67 = arith.constant 0 : index
    %223 = vector.load %arg10[%222, %c0_66, %c0_67] : memref<8x8x128xf32, #tpu.memory_space<vmem>>, vector<1x8x128xf32>
    %224 = vector.shape_cast %223 : vector<1x8x128xf32> to vector<8x128xf32>
    %cst_68 = arith.constant dense<0.000000e+00> : vector<8x128xf32>
    %225 = tpu.matmul %217, %16, %cst_68 {dimension_numbers = #tpu.dot_dimension_numbers<[1], [0], [0], [1], [0, 0, 1, 1], [], []>} : vector<8x32xf32>, vector<32x128xf32>, vector<8x128xf32> -> vector<8x128xf32>
    %226 = arith.addf %224, %225 : vector<8x128xf32>
    %227 = vector.extract_strided_slice %226 {offsets = [0, 0], sizes = [8, 32], strides = [1, 1]} : vector<8x128xf32> to vector<8x32xf32>
    %228 = arith.negf %227 : vector<8x32xf32>
    %229 = math.exp %228 : vector<8x32xf32>
    %cst_69 = arith.constant 1.000000e+00 : f32
    %230 = vector.broadcast %cst_69 : f32 to vector<8x32xf32>
    %231 = arith.addf %230, %229 : vector<8x32xf32>
    %232 = arith.divf %230, %231 : vector<8x32xf32>
    %233 = vector.extract_strided_slice %226 {offsets = [0, 32], sizes = [8, 32], strides = [1, 1]} : vector<8x128xf32> to vector<8x32xf32>
    %234 = arith.negf %233 : vector<8x32xf32>
    %235 = math.exp %234 : vector<8x32xf32>
    %cst_70 = arith.constant 1.000000e+00 : f32
    %236 = vector.broadcast %cst_70 : f32 to vector<8x32xf32>
    %237 = arith.addf %236, %235 : vector<8x32xf32>
    %238 = arith.divf %236, %237 : vector<8x32xf32>
    %239 = vector.extract_strided_slice %226 {offsets = [0, 64], sizes = [8, 32], strides = [1, 1]} : vector<8x128xf32> to vector<8x32xf32>
    %240 = math.tanh %239 : vector<8x32xf32>
    %241 = vector.extract_strided_slice %226 {offsets = [0, 96], sizes = [8, 32], strides = [1, 1]} : vector<8x128xf32> to vector<8x32xf32>
    %242 = arith.negf %241 : vector<8x32xf32>
    %243 = math.exp %242 : vector<8x32xf32>
    %cst_71 = arith.constant 1.000000e+00 : f32
    %244 = vector.broadcast %cst_71 : f32 to vector<8x32xf32>
    %245 = arith.addf %244, %243 : vector<8x32xf32>
    %246 = arith.divf %244, %245 : vector<8x32xf32>
    %247 = arith.mulf %238, %215 : vector<8x32xf32>
    %248 = arith.mulf %232, %240 : vector<8x32xf32>
    %249 = arith.addf %247, %248 : vector<8x32xf32>
    %250 = math.tanh %249 : vector<8x32xf32>
    %251 = arith.mulf %246, %250 : vector<8x32xf32>
    %252 = arith.index_cast %c6_i32 : i32 to index
    %c0_72 = arith.constant 0 : index
    %c0_73 = arith.constant 0 : index
    %253 = vector.load %arg11[%252, %c0_72, %c0_73] : memref<8x8x32xf32, #tpu.memory_space<vmem>>, vector<1x8x32xf32>
    %254 = vector.shape_cast %253 : vector<1x8x32xf32> to vector<8x32xf32>
    %255 = vector.shape_cast %251 : vector<8x32xf32> to vector<1x8x32xf32>
    tpu.vector_store %arg11[%252, %c0_72, %c0_73], %255 {strides = array<i32>} : memref<8x8x32xf32, #tpu.memory_space<vmem>>, vector<1x8x32xf32>,
    %c7_i32 = arith.constant 7 : i32
    %256 = arith.index_cast %c7_i32 : i32 to index
    %c0_74 = arith.constant 0 : index
    %c0_75 = arith.constant 0 : index
    %257 = vector.load %arg10[%256, %c0_74, %c0_75] : memref<8x8x128xf32, #tpu.memory_space<vmem>>, vector<1x8x128xf32>
    %258 = vector.shape_cast %257 : vector<1x8x128xf32> to vector<8x128xf32>
    %cst_76 = arith.constant dense<0.000000e+00> : vector<8x128xf32>
    %259 = tpu.matmul %251, %16, %cst_76 {dimension_numbers = #tpu.dot_dimension_numbers<[1], [0], [0], [1], [0, 0, 1, 1], [], []>} : vector<8x32xf32>, vector<32x128xf32>, vector<8x128xf32> -> vector<8x128xf32>
    %260 = arith.addf %258, %259 : vector<8x128xf32>
    %261 = vector.extract_strided_slice %260 {offsets = [0, 0], sizes = [8, 32], strides = [1, 1]} : vector<8x128xf32> to vector<8x32xf32>
    %262 = arith.negf %261 : vector<8x32xf32>
    %263 = math.exp %262 : vector<8x32xf32>
    %cst_77 = arith.constant 1.000000e+00 : f32
    %264 = vector.broadcast %cst_77 : f32 to vector<8x32xf32>
    %265 = arith.addf %264, %263 : vector<8x32xf32>
    %266 = arith.divf %264, %265 : vector<8x32xf32>
    %267 = vector.extract_strided_slice %260 {offsets = [0, 32], sizes = [8, 32], strides = [1, 1]} : vector<8x128xf32> to vector<8x32xf32>
    %268 = arith.negf %267 : vector<8x32xf32>
    %269 = math.exp %268 : vector<8x32xf32>
    %cst_78 = arith.constant 1.000000e+00 : f32
    %270 = vector.broadcast %cst_78 : f32 to vector<8x32xf32>
    %271 = arith.addf %270, %269 : vector<8x32xf32>
    %272 = arith.divf %270, %271 : vector<8x32xf32>
    %273 = vector.extract_strided_slice %260 {offsets = [0, 64], sizes = [8, 32], strides = [1, 1]} : vector<8x128xf32> to vector<8x32xf32>
    %274 = math.tanh %273 : vector<8x32xf32>
    %275 = vector.extract_strided_slice %260 {offsets = [0, 96], sizes = [8, 32], strides = [1, 1]} : vector<8x128xf32> to vector<8x32xf32>
    %276 = arith.negf %275 : vector<8x32xf32>
    %277 = math.exp %276 : vector<8x32xf32>
    %cst_79 = arith.constant 1.000000e+00 : f32
    %278 = vector.broadcast %cst_79 : f32 to vector<8x32xf32>
    %279 = arith.addf %278, %277 : vector<8x32xf32>
    %280 = arith.divf %278, %279 : vector<8x32xf32>
    %281 = arith.mulf %272, %249 : vector<8x32xf32>
    %282 = arith.mulf %266, %274 : vector<8x32xf32>
    %283 = arith.addf %281, %282 : vector<8x32xf32>
    %284 = math.tanh %283 : vector<8x32xf32>
    %285 = arith.mulf %280, %284 : vector<8x32xf32>
    %286 = arith.index_cast %c7_i32 : i32 to index
    %c0_80 = arith.constant 0 : index
    %c0_81 = arith.constant 0 : index
    %287 = vector.load %arg11[%286, %c0_80, %c0_81] : memref<8x8x32xf32, #tpu.memory_space<vmem>>, vector<1x8x32xf32>
    %288 = vector.shape_cast %287 : vector<1x8x32xf32> to vector<8x32xf32>
    %289 = vector.shape_cast %285 : vector<8x32xf32> to vector<1x8x32xf32>
    tpu.vector_store %arg11[%286, %c0_80, %c0_81], %289 {strides = array<i32>} : memref<8x8x32xf32, #tpu.memory_space<vmem>>, vector<1x8x32xf32>,
    %c8_i32 = arith.constant 8 : i32
    %c5 = arith.constant 5 : index
    %c0_82 = arith.constant 0 : index
    %c0_83 = arith.constant 0 : index
    %290 = vector.load %arg11[%c5, %c0_82, %c0_83] : memref<8x8x32xf32, #tpu.memory_space<vmem>>, vector<3x8x32xf32>
    %291 = vector.shape_cast %290 : vector<3x8x32xf32> to vector<24x32xf32>
    %c0_84 = arith.constant 0 : index
    %c0_85 = arith.constant 0 : index
    %292 = vector.load %arg7[%c0_84, %c0_85] : memref<32x2xf32, #tpu.memory_space<vmem>>, vector<32x2xf32>
    %cst_86 = arith.constant dense<0.000000e+00> : vector<24x2xf32>
    %293 = tpu.matmul %291, %292, %cst_86 {dimension_numbers = #tpu.dot_dimension_numbers<[1], [0], [0], [1], [0, 0, 1, 1], [], []>} : vector<24x32xf32>, vector<32x2xf32>, vector<24x2xf32> -> vector<24x2xf32>
    %c0_87 = arith.constant 0 : index
    %c0_88 = arith.constant 0 : index
    %294 = vector.load %arg8[%c0_87, %c0_88] : memref<1x2xf32, #tpu.memory_space<vmem>>, vector<1x2xf32>
    %295 = vector.broadcast %294 : vector<1x2xf32> to vector<24x2xf32>
    %296 = arith.addf %293, %295 : vector<24x2xf32>
    %297 = vector.shape_cast %296 : vector<24x2xf32> to vector<3x8x2xf32>
    %c0_89 = arith.constant 0 : index
    %c0_90 = arith.constant 0 : index
    %c0_91 = arith.constant 0 : index
    %298 = vector.load %arg9[%c0_89, %c0_90, %c0_91] : memref<3x8x2xf32, #tpu.memory_space<vmem>>, vector<3x8x2xf32>
    tpu.vector_store %arg9[%c0_89, %c0_90, %c0_91], %297 {strides = array<i32>} : memref<3x8x2xf32, #tpu.memory_space<vmem>>, vector<3x8x2xf32>,
    return
  }
  func.func @transform_0(%arg0: i32) -> (i32, i32, i32) {
    %c0_i32 = arith.constant 0 : i32
    %c0_i32_0 = arith.constant 0 : i32
    %c0_i32_1 = arith.constant 0 : i32
    %c0_i32_2 = arith.constant 0 : i32
    return %c0_i32, %c0_i32_0, %c0_i32_1 : i32, i32, i32
  }
  func.func @transform_1(%arg0: i32) -> (i32, i32) {
    %c0_i32 = arith.constant 0 : i32
    %c0_i32_0 = arith.constant 0 : i32
    %c0_i32_1 = arith.constant 0 : i32
    return %c0_i32, %c0_i32_0 : i32, i32
  }
  func.func @transform_2(%arg0: i32) -> (i32, i32) {
    %c0_i32 = arith.constant 0 : i32
    %c0_i32_0 = arith.constant 0 : i32
    %c0_i32_1 = arith.constant 0 : i32
    return %c0_i32, %c0_i32_0 : i32, i32
  }
  func.func @transform_3(%arg0: i32) -> (i32, i32) {
    %c0_i32 = arith.constant 0 : i32
    %c0_i32_0 = arith.constant 0 : i32
    %c0_i32_1 = arith.constant 0 : i32
    return %c0_i32, %c0_i32_0 : i32, i32
  }
  func.func @transform_4(%arg0: i32) -> (i32, i32) {
    %c0_i32 = arith.constant 0 : i32
    %c0_i32_0 = arith.constant 0 : i32
    %c0_i32_1 = arith.constant 0 : i32
    return %c0_i32, %c0_i32_0 : i32, i32
  }
  func.func @transform_5(%arg0: i32) -> (i32, i32) {
    %c0_i32 = arith.constant 0 : i32
    %c0_i32_0 = arith.constant 0 : i32
    %c0_i32_1 = arith.constant 0 : i32
    return %c0_i32, %c0_i32_0 : i32, i32
  }
  func.func @transform_6(%arg0: i32) -> (i32, i32) {
    %c0_i32 = arith.constant 0 : i32
    %c0_i32_0 = arith.constant 0 : i32
    %c0_i32_1 = arith.constant 0 : i32
    return %c0_i32, %c0_i32_0 : i32, i32
  }
  func.func @transform_7(%arg0: i32) -> (i32, i32) {
    %c0_i32 = arith.constant 0 : i32
    %c0_i32_0 = arith.constant 0 : i32
    %c0_i32_1 = arith.constant 0 : i32
    return %c0_i32, %c0_i32_0 : i32, i32
  }
  func.func @transform_8(%arg0: i32) -> (i32, i32, i32) {
    %c0_i32 = arith.constant 0 : i32
    %c0_i32_0 = arith.constant 0 : i32
    %c0_i32_1 = arith.constant 0 : i32
    %c0_i32_2 = arith.constant 0 : i32
    return %c0_i32, %c0_i32_0, %c0_i32_1 : i32, i32, i32
  }
}

</mosaic_0001>

<bundles_post_ra>
// kernel: simple_lstm_forecast.1
= control target key start
LH: loop header
LB: loop body
LE: loop exit
PB: predicated region body
PF: predicated region fallthrough
CT: control target
= control target key end

     0   :  { %vm67_vm0 = vcmask 1043456   ;;  %vm42_vm1 = vcmask 31744   ;;  %v912_v8 = vmov 0.0   ;;  %vm128_vm2 = vcmask 261120   ;;  %s1177_s1 = inlined_call_operand.vmem [shape: f32[4,32], index: 1, kind: input, shape index: {}]   ;;  %s1178_s0 = inlined_call_operand.vmem [shape: f32[8,8,4], index: 0, kind: input, shape index: {}]   ;;  %s1179_s4 = inlined_call_operand.vmem [shape: f32[32,128], index: 4, kind: input, shape index: {}]   ;;  %s1180_s3 = inlined_call_operand.vmem [shape: f32[32,128], index: 3, kind: input, shape index: {}]   ;;  %s1181_s2 = inlined_call_operand.vmem [shape: f32[1,32], index: 2, kind: input, shape index: {}]   ;;  %s1182_s5 = inlined_call_operand.vmem [shape: f32[1,128], index: 5, kind: input, shape index: {}]   ;;  %s1183_s6 = inlined_call_operand.vmem [shape: f32[32,2], index: 6, kind: input, shape index: {}]   ;;  %s1184_s7 = inlined_call_operand.vmem [shape: f32[1,2], index: 7, kind: input, shape index: {}]   ;;  %s1185_s8 = inlined_call_operand.vmem [shape: f32[3,8,2], index: 8, kind: output, shape index: {}]  }
   0x1   :  { %v37_v0 = vld [vmem:[%s1177_s1] sm:$0xf]  ;;  %v969_v2 = vld [vmem:[%s1179_s4 + $0x18] sm:$0xff]  ;;  %v975_v3 = vld [vmem:[%s1179_s4 + $0x10] sm:$0xff] }
   0x2   :  { %v29_v1 = vld [vmem:[%s1178_s0] sm:$0xff]  ;;  %803 = vmatpush.msk.msra.mxu0 %vm67_vm0, %v37_v0  ;;  %222 = vmatpush.msra.mxu2 %v969_v2  ;;  %v123_v4 = vld [vmem:[%s1180_s3 + $0x18] sm:$0xff]  ;;  %v984_v5 = vld [vmem:[%s1179_s4 + $0x8] sm:$0xff] }
   0x3   :  { %804 = vmatmul.msk.f32.vlgmr.msra.gmra.mxu0 %vm42_vm1, %v29_v1  ;;  %165 = vmatpush.msra.mxu1 %v123_v4  ;;  %v122_v6 = vld [vmem:[%s1180_s3 + $0x10] sm:$0xff]  ;;  %v994_v7 = vld [vmem:[%s1179_s4] sm:$0xff]  ;;  %v121_v9 = vld [vmem:[%s1180_s3 + $0x8] sm:$0xff] }
   0x4   :  { %223 = vmatpush.msra.mxu2 %v975_v3  ;;  %838 = vmatpush.msra.mxu3 %v123_v4  ;;  %v120_v10 = vld [vmem:[%s1180_s3] sm:$0xff]  ;;  %v30_v36 = vld [vmem:[%s1178_s0 + $0x8] sm:$0xff]  ;;  %v31_v37 = vld [vmem:[%s1178_s0 + $0x10] sm:$0xff] }
   0x5   :  { %166 = vmatpush.msra.mxu1 %v122_v6  ;;  %v1018_v11 = vld [vmem:[%s1181_s2] ss:$0 sm:$0xff]  ;;  %s913_s2 = smov 64   ;;  %v32_v38 = vld [vmem:[%s1178_s0 + $0x18] sm:$0xff]  ;;  %v34_v43 = vld [vmem:[%s1178_s0 + $0x28] sm:$0xff] }
   0x6   :  { %224 = vmatpush.msra.mxu2 %v984_v5  ;;  %839 = vmatpush.msra.mxu3 %v122_v6  ;;  %v1025_v15 = vld [vmem:[%s1182_s5] ss:$0 sm:$0xff]  ;;  %s914_s5 = smov 32   ;;  %v35_v45 = vld [vmem:[%s1178_s0 + $0x30] sm:$0xff]  ;;  %v36_v46 = vld [vmem:[%s1178_s0 + $0x38] sm:$0xff] }
   0x7   :  { %167 = vmatpush.msra.mxu1 %v121_v9  ;;  %v33_v41 = vld [vmem:[%s1178_s0 + $0x20] sm:$0xff] }
   0x8   :  { %225 = vmatpush.msra.mxu2 %v994_v7  ;;  %840 = vmatpush.msra.mxu3 %v121_v9 }
   0x9   :  { %226 = vmatmul.f32.vlgmr.msra.gmra.mxu2 %v912_v8  ;;  %168 = vmatpush.msra.mxu1 %v120_v10 }
   0xa   :  { %357 = vmatpush.msrb.mxu2 %v969_v2  ;;  %841 = vmatpush.msra.mxu3 %v120_v10 }
   0xb   :  { %805 = vmatmul.msk.f32.gmra.mxu0 %vm42_vm1, %v30_v36 }
   0xc   :  { %358 = vmatpush.msrb.mxu2 %v975_v3  ;;  %289 = vmatpush.msrb.mxu3 %v969_v2 }
   0xe   :  { %359 = vmatpush.msrb.mxu2 %v984_v5  ;;  %290 = vmatpush.msrb.mxu3 %v975_v3 }
  0x10   :  { %360 = vmatpush.msrb.mxu2 %v994_v7  ;;  %291 = vmatpush.msrb.mxu3 %v984_v5 }
  0x12   :  { %493 = vmatpush.msra.mxu2 %v969_v2  ;;  %292 = vmatpush.msrb.mxu3 %v994_v7 }
  0x13   :  { %806 = vmatmul.msk.f32.gmra.mxu0 %vm42_vm1, %v31_v37 }
  0x14   :  { %494 = vmatpush.msra.mxu2 %v975_v3 }
  0x16   :  { %495 = vmatpush.msra.mxu2 %v984_v5 }
  0x18   :  { %496 = vmatpush.msra.mxu2 %v994_v7 }
  0x1b   :  { %807 = vmatmul.msk.f32.gmra.mxu0 %vm42_vm1, %v32_v38 }
  0x23   :  { %808 = vmatmul.msk.f32.gmra.mxu0 %vm42_vm1, %v33_v41 }
  0x2b   :  { %809 = vmatmul.msk.f32.gmra.mxu0 %vm42_vm1, %v34_v43 }
  0x33   :  { %810 = vmatmul.msk.f32.gmra.mxu0 %vm42_vm1, %v35_v45 }
  0x3b   :  { %811 = vmatmul.msk.f32.gmra.mxu0 %vm42_vm1, %v36_v46 }
  0x80   :  { %v88_v12 = vpop.f32.mrf.mxu0 }
  0x81   :  { %v89_v13 = vadd.f32 %v1018_v11, %v88_v12 }
  0x83   :  { %v112_v14 = vmax.f32 %v89_v13, 0.0 }
  0x85   :  { %812 = vmatmul.msk.f32.vlgmr.msra.gmra.mxu1 %vm128_vm2, %v112_v14 }
  0x88   :  { %v91_v47 = vpop.f32.mrf.mxu0 }
  0x89   :  { %v92_v48 = vadd.f32 %v1018_v11, %v91_v47 }
  0x8b   :  { %v113_v49 = vmax.f32 %v92_v48, 0.0 }
  0x8c   :  { %v227_v17 = vpop.f32.mrf.mxu2 }
  0x8d   :  { %813 = vmatmul.msk.f32.gmra.mxu1 %vm128_vm2, %v113_v49 }
  0x90   :  { %v94_v50 = vpop.f32.mrf.mxu0 }
  0x91   :  { %v95_v51 = vadd.f32 %v1018_v11, %v94_v50 }
  0x93   :  { %v114_v52 = vmax.f32 %v95_v51, 0.0 }
  0x95   :  { %814 = vmatmul.msk.f32.gmra.mxu1 %vm128_vm2, %v114_v52 }
  0x98   :  { %v97_v53 = vpop.f32.mrf.mxu0 }
  0x99   :  { %v98_v54 = vadd.f32 %v1018_v11, %v97_v53 }
  0x9b   :  { %v115_v55 = vmax.f32 %v98_v54, 0.0 }
  0x9d   :  { %815 = vmatmul.msk.f32.gmra.mxu1 %vm128_vm2, %v115_v55 }
  0xa0   :  { %v100_v58 = vpop.f32.mrf.mxu0 }
  0xa1   :  { %v101_v59 = vadd.f32 %v1018_v11, %v100_v58 }
  0xa3   :  { %v116_v60 = vmax.f32 %v101_v59, 0.0 }
  0xa5   :  { %816 = vmatmul.msk.f32.gmra.mxu1 %vm128_vm2, %v116_v60 }
  0xa8   :  { %v103_v61 = vpop.f32.mrf.mxu0 }
  0xa9   :  { %v104_v62 = vadd.f32 %v1018_v11, %v103_v61 }
  0xab   :  { %v117_v63 = vmax.f32 %v104_v62, 0.0 }
  0xad   :  { %817 = vmatmul.msk.f32.gmra.mxu1 %vm128_vm2, %v117_v63 }
  0xb0   :  { %v106_v0 = vpop.f32.mrf.mxu0 }
  0xb1   :  { %v107_v1 = vadd.f32 %v1018_v11, %v106_v0 }
  0xb3   :  { %v118_v4 = vmax.f32 %v107_v1, 0.0 }
  0xb5   :  { %818 = vmatmul.msk.f32.gmra.mxu1 %vm128_vm2, %v118_v4 }
  0xb8   :  { %v109_v6 = vpop.f32.mrf.mxu0 }
  0xb9   :  { %v110_v8 = vadd.f32 %v1018_v11, %v109_v6 }
  0xbb   :  { %v119_v9 = vmax.f32 %v110_v8, 0.0 }
  0xbd   :  { %819 = vmatmul.msk.f32.vlgmr.msra.gmra.mxu3 %vm128_vm2, %v119_v9 }
  0xbe   :  { %425 = vmatpush.msra.mxu3 %v969_v2 }
  0xc0   :  { %426 = vmatpush.msra.mxu3 %v975_v3 }
  0xc2   :  { %427 = vmatpush.msra.mxu3 %v984_v5 }
  0xc4   :  { %428 = vmatpush.msra.mxu3 %v994_v7 }
 0x102   :  { %v170_v16 = vpop.f32.mrf.mxu1 }
 0x103   :  { %v171_v18 = vadd.f32 %v1025_v15, %v170_v16 }
 0x105   :  { %v230_v19 = vadd.f32 %v227_v17, %v171_v18 }
 0x107   :  { %848 = vtanh.f32 %v230_v19  ;;  %v820_v21 = vmul.f32 -1.442695, %v230_v19 }
 0x109   :  { %850 = vpow2.f32 %v820_v21 }
 0x10a   :  { %v173_v12 = vpop.f32.mrf.mxu1 }
 0x10b   :  { %v174_v13 = vadd.f32 %v1025_v15, %v173_v12 }
 0x10d   :  { %v849_v20 = vpop.eup %848 }
 0x10e   :  { %253 = vrot.lane.b32.xlu0 %v849_v20, %s913_s2 }
 0x10f   :  { %v851_v22 = vpop.eup %850 }
 0x110   :  { %v234_v23 = vadd.f32 1.0, %v851_v22 }
 0x112   :  { %852 = vrcp.f32 %v234_v23  ;;  %v246_v29 = vand.u32 2147483648, %v234_v23  ;;  %vm240_vm4 = vweird.f32 %v234_v23  ;;  %v244_v30 = vand.u32 2147483647, %v234_v23 }
 0x114   :  { %v247_v32 = vor.u32 1.1754944e-38, %v246_v29  ;;  %vm245_vm6 = vcmp.eq.f32.partialorder %v244_v30, 8.507059e+37 }
 0x118   :  { %v853_v24 = vpop.eup %852 }
 0x119   :  { %v236_v25 = vmul.f32 %v853_v24, %v234_v23  ;;  %vm241_vm3 = vweird.f32 %v853_v24 }
 0x11a   :  { %vm242_vm5 = vmor %vm240_vm4, %vm241_vm3 }
 0x11b   :  { %v237_v26 = vsub.f32 1.0, %v236_v25 }
 0x11d   :  { %v238_v27 = vmul.f32 %v853_v24, %v237_v26 }
 0x11f   :  { %v239_v28 = vadd.f32 %v853_v24, %v238_v27 }
 0x121   :  { %v243_v31 = vsel %vm242_vm5, %v853_v24, %v239_v28 }
 0x122   :  { %v248_v34 = vsel %vm245_vm6, %v247_v32, %v243_v31 }
 0x123   :  { %v251_v39 = vmul.f32 0.0, %v248_v34 }
 0x140   :  { %v1086_v11 = vpop.f32.mrf.mxu3 }
 0x180   :  { %v254_v33 = vpop.permute.xlu0 %253 }
 0x181   :  { %v256_v35 = vmul.f32 %v254_v33, %v248_v34 }
 0x183   :  { %258 = vrot.lane.b32.xlu0 %v256_v35, %s914_s5 }
 0x1f5   :  { %v259_v40 = vpop.permute.xlu0 %258 }
 0x1f6   :  { %v1045_v42 = vadd.f32 %v259_v40, %v251_v39  ;;  %v176_v40 = vpop.f32.mrf.mxu1 }
 0x1f7   :  { %v177_v41 = vadd.f32 %v1025_v15, %v176_v40 }
 0x1f8   :  { %854 = vtanh.f32 %v1045_v42 }
 0x1fe   :  { %v855_v44 = vpop.eup %854  ;;  %v179_v6 = vpop.f32.mrf.mxu1 }
 0x1ff   :  { %264 = vrot.lane.b32.xlu1 %v855_v44, %s913_s2  ;;  %v180_v8 = vadd.f32 %v1025_v15, %v179_v6 }
 0x271   :  { %v265_v56 = vpop.permute.xlu1 %264 }
 0x272   :  { %v267_v57 = vmul.f32 %v265_v56, %v248_v34 }
 0x274   :  { %269 = vrot.lane.b32.xlu1 %v267_v57, %s914_s5 }
 0x2e6   :  { %v270_v10 = vpop.permute.xlu1 %269 }
 0x2e7   :  { %821 = vmatmul.msk.f32.vlgmr.msrb.gmra.mxu3 %vm128_vm2, %v270_v10 }
 0x2e8   :  { %561 = vmatpush.msrb.mxu3 %v969_v2 }
 0x2ea   :  { %562 = vmatpush.msrb.mxu3 %v975_v3 }
 0x2ec   :  { %563 = vmatpush.msrb.mxu3 %v984_v5 }
 0x2ee   :  { %564 = vmatpush.msrb.mxu3 %v994_v7 }
 0x36a   :  { %v294_v14 = vpop.f32.mrf.mxu3 }
 0x36b   :  { %v297_v16 = vadd.f32 %v294_v14, %v174_v13 }
 0x36d   :  { %856 = vtanh.f32 %v297_v16  ;;  %v822_v18 = vmul.f32 -1.442695, %v297_v16 }
 0x36f   :  { %858 = vpow2.f32 %v822_v18 }
 0x373   :  { %v857_v17 = vpop.eup %856 }
 0x374   :  { %320 = vrot.lane.b32.xlu2 %v857_v17, %s913_s2 }
 0x375   :  { %v859_v19 = vpop.eup %858 }
 0x376   :  { %v301_v20 = vadd.f32 1.0, %v859_v19 }
 0x378   :  { %860 = vrcp.f32 %v301_v20  ;;  %v313_v26 = vand.u32 2147483648, %v301_v20  ;;  %vm307_vm8 = vweird.f32 %v301_v20  ;;  %v311_v27 = vand.u32 2147483647, %v301_v20 }
 0x37a   :  { %v314_v29 = vor.u32 1.1754944e-38, %v313_v26  ;;  %vm312_vm10 = vcmp.eq.f32.partialorder %v311_v27, 8.507059e+37 }
 0x37e   :  { %v861_v21 = vpop.eup %860 }
 0x37f   :  { %v303_v22 = vmul.f32 %v861_v21, %v301_v20  ;;  %vm308_vm7 = vweird.f32 %v861_v21 }
 0x380   :  { %vm309_vm9 = vmor %vm307_vm8, %vm308_vm7 }
 0x381   :  { %v304_v23 = vsub.f32 1.0, %v303_v22 }
 0x383   :  { %v305_v24 = vmul.f32 %v861_v21, %v304_v23 }
 0x385   :  { %v306_v25 = vadd.f32 %v861_v21, %v305_v24 }
 0x387   :  { %v310_v28 = vsel %vm309_vm9, %v861_v21, %v306_v25 }
 0x388   :  { %v315_v31 = vsel %vm312_vm10, %v314_v29, %v310_v28 }
 0x389   :  { %v318_v33 = vmul.f32 %v315_v31, %v1045_v42 }
 0x3ce   :  { %v321_v30 = vpop.permute.xlu2 %320 }
 0x3cf   :  { %v323_v32 = vmul.f32 %v321_v30, %v315_v31 }
 0x3d1   :  { %325 = vrot.lane.b32.xlu2 %v323_v32, %s914_s5  ;;  %v182_v32 = vpop.f32.mrf.mxu1 }
 0x42b   :  { %v326_v34 = vpop.permute.xlu2 %325 }
 0x42c   :  { %v328_v35 = vadd.f32 %v326_v34, %v318_v33  ;;  %v183_v33 = vadd.f32 %v1025_v15, %v182_v32 }
 0x42e   :  { %862 = vtanh.f32 %v328_v35 }
 0x434   :  { %v863_v36 = vpop.eup %862 }
 0x435   :  { %331 = vrot.lane.b32.xlu0 %v863_v36, %s913_s2 }
 0x4a7   :  { %v332_v37 = vpop.permute.xlu0 %331 }
 0x4a8   :  { %v334_v38 = vmul.f32 %v332_v37, %v315_v31 }
 0x4aa   :  { %336 = vrot.lane.b32.xlu1 %v334_v38, %s914_s5 }
 0x51c   :  { %v337_v39 = vpop.permute.xlu1 %336 }
 0x51d   :  { %823 = vmatmul.msk.f32.vlgmr.msrb.gmra.mxu2 %vm128_vm2, %v337_v39 }
 0x51e   :  { %629 = vmatpush.msrb.mxu2 %v969_v2 }
 0x520   :  { %630 = vmatpush.msrb.mxu2 %v975_v3 }
 0x522   :  { %631 = vmatpush.msrb.mxu2 %v984_v5 }
 0x524   :  { %632 = vmatpush.msrb.mxu2 %v994_v7 }
 0x5a0   :  { %v362_v42 = vpop.f32.mrf.mxu2 }
 0x5a1   :  { %v365_v43 = vadd.f32 %v362_v42, %v177_v41 }
 0x5a3   :  { %864 = vtanh.f32 %v365_v43  ;;  %v824_v45 = vmul.f32 -1.442695, %v365_v43 }
 0x5a5   :  { %866 = vpow2.f32 %v824_v45 }
 0x5a9   :  { %v865_v44 = vpop.eup %864 }
 0x5aa   :  { %388 = vrot.lane.b32.xlu2 %v865_v44, %s913_s2 }
 0x5ab   :  { %v867_v46 = vpop.eup %866 }
 0x5ac   :  { %v369_v47 = vadd.f32 1.0, %v867_v46 }
 0x5ae   :  { %868 = vrcp.f32 %v369_v47  ;;  %v381_v53 = vand.u32 2147483648, %v369_v47  ;;  %vm375_vm12 = vweird.f32 %v369_v47  ;;  %v379_v54 = vand.u32 2147483647, %v369_v47 }
 0x5b0   :  { %v382_v56 = vor.u32 1.1754944e-38, %v381_v53  ;;  %vm380_vm14 = vcmp.eq.f32.partialorder %v379_v54, 8.507059e+37 }
 0x5b4   :  { %v869_v48 = vpop.eup %868 }
 0x5b5   :  { %v371_v49 = vmul.f32 %v869_v48, %v369_v47  ;;  %vm376_vm11 = vweird.f32 %v869_v48 }
 0x5b6   :  { %vm377_vm13 = vmor %vm375_vm12, %vm376_vm11  ;;  %vm795_vm12 = vcmask 15360  }
 0x5b7   :  { %v372_v50 = vsub.f32 1.0, %v371_v49 }
 0x5b9   :  { %v373_v51 = vmul.f32 %v869_v48, %v372_v50 }
 0x5bb   :  { %v374_v52 = vadd.f32 %v869_v48, %v373_v51 }
 0x5bd   :  { %v378_v55 = vsel %vm377_vm13, %v869_v48, %v374_v52 }
 0x5be   :  { %v383_v58 = vsel %vm380_vm14, %v382_v56, %v378_v55 }
 0x5bf   :  { %v386_v60 = vmul.f32 %v383_v58, %v328_v35 }
 0x604   :  { %v389_v57 = vpop.permute.xlu2 %388 }
 0x605   :  { %v391_v59 = vmul.f32 %v389_v57, %v383_v58 }
 0x607   :  { %393 = vrot.lane.b32.xlu0 %v391_v59, %s914_s5  ;;  %v185_v59 = vpop.f32.mrf.mxu1 }
 0x679   :  { %v394_v61 = vpop.permute.xlu0 %393 }
 0x67a   :  { %v396_v62 = vadd.f32 %v394_v61, %v386_v60  ;;  %v186_v60 = vadd.f32 %v1025_v15, %v185_v59 }
 0x67c   :  { %870 = vtanh.f32 %v396_v62 }
 0x682   :  { %v871_v63 = vpop.eup %870 }
 0x683   :  { %399 = vrot.lane.b32.xlu1 %v871_v63, %s913_s2 }
 0x6f5   :  { %v400_v0 = vpop.permute.xlu1 %399 }
 0x6f6   :  { %v402_v1 = vmul.f32 %v400_v0, %v383_v58 }
 0x6f8   :  { %404 = vrot.lane.b32.xlu2 %v402_v1, %s914_s5 }
 0x752   :  { %v405_v4 = vpop.permute.xlu2 %404 }
 0x753   :  { %825 = vmatmul.msk.f32.vlgmr.msra.gmra.mxu3 %vm128_vm2, %v405_v4 }
 0x754   :  { %697 = vmatpush.msra.mxu3 %v969_v2 }
 0x756   :  { %698 = vmatpush.msra.mxu3 %v975_v3 }
 0x758   :  { %699 = vmatpush.msra.mxu3 %v984_v5 }
 0x75a   :  { %700 = vmatpush.msra.mxu3 %v994_v7 }
 0x7d6   :  { %v430_v9 = vpop.f32.mrf.mxu3 }
 0x7d7   :  { %v433_v10 = vadd.f32 %v430_v9, %v180_v8 }
 0x7d9   :  { %872 = vtanh.f32 %v433_v10  ;;  %v826_v13 = vmul.f32 -1.442695, %v433_v10 }
 0x7db   :  { %874 = vpow2.f32 %v826_v13 }
 0x7df   :  { %v873_v12 = vpop.eup %872 }
 0x7e0   :  { %456 = vrot.lane.b32.xlu0 %v873_v12, %s913_s2 }
 0x7e1   :  { %v875_v14 = vpop.eup %874 }
 0x7e2   :  { %v437_v16 = vadd.f32 1.0, %v875_v14 }
 0x7e4   :  { %876 = vrcp.f32 %v437_v16  ;;  %v449_v7 = vand.u32 2147483648, %v437_v16  ;;  %vm443_vm0 = vweird.f32 %v437_v16  ;;  %v447_v19 = vand.u32 2147483647, %v437_v16 }
 0x7e6   :  { %v450_v21 = vor.u32 1.1754944e-38, %v449_v7  ;;  %vm448_vm3 = vcmp.eq.f32.partialorder %v447_v19, 8.507059e+37 }
 0x7ea   :  { %v877_v2 = vpop.eup %876 }
 0x7eb   :  { %v439_v3 = vmul.f32 %v877_v2, %v437_v16  ;;  %vm444_vm15 = vweird.f32 %v877_v2 }
 0x7ec   :  { %vm445_vm1 = vmor %vm443_vm0, %vm444_vm15 }
 0x7ed   :  { %v440_v17 = vsub.f32 1.0, %v439_v3 }
 0x7ef   :  { %v441_v5 = vmul.f32 %v877_v2, %v440_v17 }
 0x7f1   :  { %v442_v18 = vadd.f32 %v877_v2, %v441_v5 }
 0x7f3   :  { %v446_v20 = vsel %vm445_vm1, %v877_v2, %v442_v18 }
 0x7f4   :  { %v451_v23 = vsel %vm448_vm3, %v450_v21, %v446_v20 }
 0x7f5   :  { %v454_v25 = vmul.f32 %v451_v23, %v396_v62 }
 0x852   :  { %v457_v22 = vpop.permute.xlu0 %456 }
 0x853   :  { %v459_v24 = vmul.f32 %v457_v22, %v451_v23 }
 0x855   :  { %461 = vrot.lane.b32.xlu1 %v459_v24, %s914_s5  ;;  %v754_v24 = vld [vmem:[%s1183_s6 + $0x10] sm:$0xff] }
 0x8c7   :  { %v462_v26 = vpop.permute.xlu1 %461 }
 0x8c8   :  { %v464_v27 = vadd.f32 %v462_v26, %v454_v25  ;;  %v753_v25 = vld [vmem:[%s1183_s6 + $0x8] sm:$0xff]  ;;  %v752_v26 = vld [vmem:[%s1183_s6] sm:$0xff] }
 0x8ca   :  { %878 = vtanh.f32 %v464_v27 }
 0x8d0   :  { %v879_v28 = vpop.eup %878 }
 0x8d1   :  { %467 = vrot.lane.b32.xlu2 %v879_v28, %s913_s2 }
 0x92b   :  { %v468_v29 = vpop.permute.xlu2 %467 }
 0x92c   :  { %v470_v30 = vmul.f32 %v468_v29, %v451_v23  ;;  %v755_v23 = vld [vmem:[%s1183_s6 + $0x18] sm:$0xff]  ;;  %v188_v29 = vpop.f32.mrf.mxu1 }
 0x92e   :  { %472 = vrot.lane.b32.xlu0 %v470_v30, %s914_s5  ;;  %v189_v30 = vadd.f32 %v1025_v15, %v188_v29 }
 0x9a0   :  { %v473_v31 = vpop.permute.xlu0 %472 }
 0x9a1   :  { %827 = vmatmul.msk.f32.vlgmr.msra.gmra.mxu2 %vm128_vm2, %v473_v31 }
 0x9a2   :  { %781 = vmatpush.msra.mxu2 %v755_v23 }
 0x9a4   :  { %782 = vmatpush.msra.mxu2 %v754_v24 }
 0x9a6   :  { %783 = vmatpush.msra.mxu2 %v753_v25 }
 0x9a8   :  { %784 = vmatpush.msra.mxu2 %v752_v26 }
 0xa24   :  { %v498_v34 = vpop.f32.mrf.mxu2 }
 0xa25   :  { %v501_v35 = vadd.f32 %v498_v34, %v183_v33  ;;  %v1145_v33 = vld [vmem:[%s1184_s7] ss:$0 sm:$0xff] }
 0xa27   :  { %880 = vtanh.f32 %v501_v35  ;;  %v828_v37 = vmul.f32 -1.442695, %v501_v35 }
 0xa29   :  { %882 = vpow2.f32 %v828_v37 }
 0xa2d   :  { %v881_v36 = vpop.eup %880 }
 0xa2e   :  { %524 = vrot.lane.b32.xlu1 %v881_v36, %s913_s2 }
 0xa2f   :  { %v883_v38 = vpop.eup %882 }
 0xa30   :  { %v505_v39 = vadd.f32 1.0, %v883_v38 }
 0xa32   :  { %884 = vrcp.f32 %v505_v39  ;;  %v517_v45 = vand.u32 2147483648, %v505_v39  ;;  %vm511_vm5 = vweird.f32 %v505_v39  ;;  %v515_v46 = vand.u32 2147483647, %v505_v39 }
 0xa34   :  { %v518_v48 = vor.u32 1.1754944e-38, %v517_v45  ;;  %vm516_vm7 = vcmp.eq.f32.partialorder %v515_v46, 8.507059e+37 }
 0xa38   :  { %v885_v40 = vpop.eup %884 }
 0xa39   :  { %v507_v41 = vmul.f32 %v885_v40, %v505_v39  ;;  %vm512_vm4 = vweird.f32 %v885_v40 }
 0xa3a   :  { %vm513_vm6 = vmor %vm511_vm5, %vm512_vm4 }
 0xa3b   :  { %v508_v42 = vsub.f32 1.0, %v507_v41 }
 0xa3d   :  { %v509_v43 = vmul.f32 %v885_v40, %v508_v42 }
 0xa3f   :  { %v510_v44 = vadd.f32 %v885_v40, %v509_v43 }
 0xa41   :  { %v514_v47 = vsel %vm513_vm6, %v885_v40, %v510_v44 }
 0xa42   :  { %v519_v50 = vsel %vm516_vm7, %v518_v48, %v514_v47 }
 0xa43   :  { %v522_v52 = vmul.f32 %v519_v50, %v464_v27 }
 0xaa0   :  { %v525_v49 = vpop.permute.xlu1 %524 }
 0xaa1   :  { %v527_v51 = vmul.f32 %v525_v49, %v519_v50 }
 0xaa3   :  { %529 = vrot.lane.b32.xlu2 %v527_v51, %s914_s5 }
 0xafd   :  { %v530_v53 = vpop.permute.xlu2 %529 }
 0xafe   :  { %v532_v54 = vadd.f32 %v530_v53, %v522_v52 }
 0xb00   :  { %886 = vtanh.f32 %v532_v54 }
 0xb06   :  { %v887_v55 = vpop.eup %886 }
 0xb07   :  { %535 = vrot.lane.b32.xlu0 %v887_v55, %s913_s2 }
 0xb79   :  { %v536_v56 = vpop.permute.xlu0 %535 }
 0xb7a   :  { %v538_v57 = vmul.f32 %v536_v56, %v519_v50 }
 0xb7c   :  { %540 = vrot.lane.b32.xlu1 %v538_v57, %s914_s5 }
 0xbee   :  { %v541_v58 = vpop.permute.xlu1 %540 }
 0xbef   :  { %829 = vmatmul.msk.f32.vlgmr.msrb.gmra.mxu3 %vm128_vm2, %v541_v58 }
 0xc72   :  { %v566_v61 = vpop.f32.mrf.mxu3 }
 0xc73   :  { %v569_v62 = vadd.f32 %v566_v61, %v186_v60  ;;  %v192_v60 = vadd.f32 %v1025_v15, %v1086_v11 }
 0xc75   :  { %888 = vtanh.f32 %v569_v62  ;;  %v830_v0 = vmul.f32 -1.442695, %v569_v62 }
 0xc77   :  { %890 = vpow2.f32 %v830_v0 }
 0xc7b   :  { %v889_v63 = vpop.eup %888 }
 0xc7c   :  { %592 = vrot.lane.b32.xlu2 %v889_v63, %s913_s2 }
 0xc7d   :  { %v891_v1 = vpop.eup %890 }
 0xc7e   :  { %v573_v4 = vadd.f32 1.0, %v891_v1 }
 0xc80   :  { %892 = vrcp.f32 %v573_v4  ;;  %v585_v13 = vand.u32 2147483648, %v573_v4  ;;  %vm579_vm9 = vweird.f32 %v573_v4  ;;  %v583_v14 = vand.u32 2147483647, %v573_v4 }
 0xc82   :  { %v586_v2 = vor.u32 1.1754944e-38, %v585_v13  ;;  %vm584_vm11 = vcmp.eq.f32.partialorder %v583_v14, 8.507059e+37 }
 0xc86   :  { %v893_v6 = vpop.eup %892 }
 0xc87   :  { %v575_v8 = vmul.f32 %v893_v6, %v573_v4  ;;  %vm580_vm8 = vweird.f32 %v893_v6 }
 0xc88   :  { %vm581_vm10 = vmor %vm579_vm9, %vm580_vm8 }
 0xc89   :  { %v576_v9 = vsub.f32 1.0, %v575_v8 }
 0xc8b   :  { %v577_v10 = vmul.f32 %v893_v6, %v576_v9 }
 0xc8d   :  { %v578_v12 = vadd.f32 %v893_v6, %v577_v10 }
 0xc8f   :  { %v582_v16 = vsel %vm581_vm10, %v893_v6, %v578_v12 }
 0xc90   :  { %v587_v17 = vsel %vm584_vm11, %v586_v2, %v582_v16 }
 0xc91   :  { %v590_v18 = vmul.f32 %v587_v17, %v532_v54 }
 0xcd6   :  { %v593_v3 = vpop.permute.xlu2 %592 }
 0xcd7   :  { %v595_v5 = vmul.f32 %v593_v3, %v587_v17 }
 0xcd9   :  { %597 = vrot.lane.b32.xlu0 %v595_v5, %s914_s5 }
 0xd4b   :  { %v598_v7 = vpop.permute.xlu0 %597 }
 0xd4c   :  { %v600_v19 = vadd.f32 %v598_v7, %v590_v18 }
 0xd4e   :  { %894 = vtanh.f32 %v600_v19 }
 0xd54   :  { %v895_v20 = vpop.eup %894 }
 0xd55   :  { %603 = vrot.lane.b32.xlu1 %v895_v20, %s913_s2 }
 0xdc7   :  { %v604_v21 = vpop.permute.xlu1 %603 }
 0xdc8   :  { %v606_v22 = vmul.f32 %v604_v21, %v587_v17 }
 0xdca   :  { %608 = vrot.lane.b32.xlu2 %v606_v22, %s914_s5 }
 0xe24   :  { %v609_v27 = vpop.permute.xlu2 %608 }
 0xe25   :  { %612 = vst.msk [vmem:[#allocation3 + $0x28] sm:$0xff] %vm128_vm2, %v609_v27  ;;  %831 = vmatmul.msk.f32.vlgmr.msrb.gmra.mxu2 %vm128_vm2, %v609_v27 }
 0xe2c   :  { %v749_v28 = vld [vmem:[#allocation3 + $0x28] sm:$0xff] }
 0xe2d   :  { %835 = vmatmul.msk.f32.vlgmr.msra.gmra.mxu2 %vm128_vm2, %v749_v28 }
 0xea8   :  { %v634_v31 = vpop.f32.mrf.mxu2 }
 0xea9   :  { %v637_v32 = vadd.f32 %v634_v31, %v189_v30 }
 0xeab   :  { %896 = vtanh.f32 %v637_v32  ;;  %v832_v37 = vmul.f32 -1.442695, %v637_v32 }
 0xead   :  { %898 = vpow2.f32 %v832_v37 }
 0xeb0   :  { %v786_v34 = vpop.f32.mrf.mxu2 }
 0xeb1   :  { %v897_v35 = vpop.eup %896  ;;  %v787_v36 = vadd.f32 %v1145_v33, %v786_v34 }
 0xeb2   :  { %660 = vrot.lane.b32.xlu0 %v897_v35, %s913_s2 }
 0xeb3   :  { %796 = vst.msk [vmem:[%s1185_s8] sm:$0xff] %vm795_vm12, %v787_v36  ;;  %v899_v38 = vpop.eup %898 }
 0xeb4   :  { %v641_v39 = vadd.f32 1.0, %v899_v38 }
 0xeb6   :  { %900 = vrcp.f32 %v641_v39  ;;  %v653_v45 = vand.u32 2147483648, %v641_v39  ;;  %vm647_vm14 = vweird.f32 %v641_v39  ;;  %v651_v46 = vand.u32 2147483647, %v641_v39 }
 0xeb8   :  { %v654_v48 = vor.u32 1.1754944e-38, %v653_v45  ;;  %vm652_vm0 = vcmp.eq.f32.partialorder %v651_v46, 8.507059e+37 }
 0xebc   :  { %v901_v40 = vpop.eup %900 }
 0xebd   :  { %v643_v41 = vmul.f32 %v901_v40, %v641_v39  ;;  %vm648_vm13 = vweird.f32 %v901_v40 }
 0xebe   :  { %vm649_vm15 = vmor %vm647_vm14, %vm648_vm13 }
 0xebf   :  { %v644_v42 = vsub.f32 1.0, %v643_v41 }
 0xec1   :  { %v645_v43 = vmul.f32 %v901_v40, %v644_v42 }
 0xec3   :  { %v646_v44 = vadd.f32 %v901_v40, %v645_v43 }
 0xec5   :  { %v650_v47 = vsel %vm649_vm15, %v901_v40, %v646_v44 }
 0xec6   :  { %v655_v50 = vsel %vm652_vm0, %v654_v48, %v650_v47 }
 0xec7   :  { %v658_v52 = vmul.f32 %v655_v50, %v600_v19 }
 0xf24   :  { %v661_v49 = vpop.permute.xlu0 %660 }
 0xf25   :  { %v663_v51 = vmul.f32 %v661_v49, %v655_v50 }
 0xf27   :  { %665 = vrot.lane.b32.xlu1 %v663_v51, %s914_s5 }
 0xf99   :  { %v666_v53 = vpop.permute.xlu1 %665 }
 0xf9a   :  { %v668_v54 = vadd.f32 %v666_v53, %v658_v52 }
 0xf9c   :  { %902 = vtanh.f32 %v668_v54 }
 0xfa2   :  { %v903_v55 = vpop.eup %902 }
 0xfa3   :  { %671 = vrot.lane.b32.xlu2 %v903_v55, %s913_s2 }
 0xffd   :  { %v672_v56 = vpop.permute.xlu2 %671 }
 0xffe   :  { %v674_v57 = vmul.f32 %v672_v56, %v655_v50 }
0x1000   :  { %676 = vrot.lane.b32.xlu0 %v674_v57, %s914_s5 }
0x1072   :  { %v677_v58 = vpop.permute.xlu0 %676 }
0x1073   :  { %680 = vst.msk [vmem:[#allocation3 + $0x30] sm:$0xff] %vm128_vm2, %v677_v58  ;;  %833 = vmatmul.msk.f32.vlgmr.msra.gmra.mxu3 %vm128_vm2, %v677_v58 }
0x107a   :  { %v750_v59 = vld [vmem:[#allocation3 + $0x30] sm:$0xff] }
0x107b   :  { %836 = vmatmul.msk.f32.gmra.mxu2 %vm128_vm2, %v750_v59 }
0x10f6   :  { %v702_v61 = vpop.f32.mrf.mxu3 }
0x10f7   :  { %v705_v62 = vadd.f32 %v702_v61, %v192_v60 }
0x10f9   :  { %904 = vtanh.f32 %v705_v62  ;;  %v834_v4 = vmul.f32 -1.442695, %v705_v62 }
0x10fb   :  { %906 = vpow2.f32 %v834_v4 }
0x10fe   :  { %v789_v63 = vpop.f32.mrf.mxu2 }
0x10ff   :  { %v905_v0 = vpop.eup %904  ;;  %v790_v1 = vadd.f32 %v1145_v33, %v789_v63 }
0x1100   :  { %728 = vrot.lane.b32.xlu1 %v905_v0, %s913_s2 }
0x1101   :  { %797 = vst.msk [vmem:[%s1185_s8 + $0x8] sm:$0xff] %vm795_vm12, %v790_v1  ;;  %v907_v6 = vpop.eup %906 }
0x1102   :  { %v709_v8 = vadd.f32 1.0, %v907_v6 }
0x1104   :  { %908 = vrcp.f32 %v709_v8  ;;  %v721_v13 = vand.u32 2147483648, %v709_v8  ;;  %vm715_vm3 = vweird.f32 %v709_v8  ;;  %v719_v14 = vand.u32 2147483647, %v709_v8 }
0x1106   :  { %v722_v2 = vor.u32 1.1754944e-38, %v721_v13  ;;  %vm720_vm5 = vcmp.eq.f32.partialorder %v719_v14, 8.507059e+37 }
0x110a   :  { %v909_v15 = vpop.eup %908 }
0x110b   :  { %v711_v11 = vmul.f32 %v909_v15, %v709_v8  ;;  %vm716_vm1 = vweird.f32 %v909_v15 }
0x110c   :  { %vm717_vm4 = vmor %vm715_vm3, %vm716_vm1 }
0x110d   :  { %v712_v9 = vsub.f32 1.0, %v711_v11 }
0x110f   :  { %v713_v10 = vmul.f32 %v909_v15, %v712_v9 }
0x1111   :  { %v714_v12 = vadd.f32 %v909_v15, %v713_v10 }
0x1113   :  { %v718_v16 = vsel %vm717_vm4, %v909_v15, %v714_v12 }
0x1114   :  { %v723_v17 = vsel %vm720_vm5, %v722_v2, %v718_v16 }
0x1115   :  { %v726_v18 = vmul.f32 %v723_v17, %v668_v54 }
0x1172   :  { %v729_v3 = vpop.permute.xlu1 %728 }
0x1173   :  { %v731_v5 = vmul.f32 %v729_v3, %v723_v17 }
0x1175   :  { %733 = vrot.lane.b32.xlu2 %v731_v5, %s914_s5 }
0x11cf   :  { %v734_v7 = vpop.permute.xlu2 %733 }
0x11d0   :  { %v736_v19 = vadd.f32 %v734_v7, %v726_v18 }
0x11d2   :  { %910 = vtanh.f32 %v736_v19 }
0x11d8   :  { %v911_v20 = vpop.eup %910 }
0x11d9   :  { %739 = vrot.lane.b32.xlu0 %v911_v20, %s913_s2 }
0x124b   :  { %v740_v21 = vpop.permute.xlu0 %739 }
0x124c   :  { %v742_v22 = vmul.f32 %v740_v21, %v723_v17 }
0x124e   :  { %744 = vrot.lane.b32.xlu1 %v742_v22, %s914_s5 }
0x12c0   :  { %v745_v23 = vpop.permute.xlu1 %744 }
0x12c1   :  { %748 = vst.msk [vmem:[#allocation3 + $0x38] sm:$0xff] %vm128_vm2, %v745_v23 }
0x12c8   :  { %v751_v24 = vld [vmem:[#allocation3 + $0x38] sm:$0xff] }
0x12c9   :  { %837 = vmatmul.msk.f32.gmra.mxu2 %vm128_vm2, %v751_v24 }
0x134c   :  { %v792_v25 = vpop.f32.mrf.mxu2 }
0x134d   :  { %v793_v26 = vadd.f32 %v1145_v33, %v792_v25 }
0x134f   :  { %798 = vst.msk [vmem:[%s1185_s8 + $0x10] sm:$0xff] %vm795_vm12, %v793_v26 }

</bundles_post_ra>
